<compile_context>
chip_gen: v7x
topology: tpu7x:2x2x1
jax: 0.10.0
libtpu: 0.0.40
codegen_flags: <defaults>
</compile_context>

<pallas_src>
import functools

import jax
import jax.numpy as jnp
from jax import lax
from jax.experimental import pallas as pl
from jax.experimental.pallas import tpu as pltpu


# ----------------------------------------------------------------------------
# Pallas kernels
# ----------------------------------------------------------------------------
def _conv1d_im2col_kernel(x_ref, w_ref, o_ref, xcol_ref, *,
                          K, cin, stride, T_out, Bt, Kc1_pad, apply_tanh):
    """Fused im2col Conv1d (+bias, +optional tanh) for one (group, batch-tile) block.

    x_ref:    (Bt, 1, cin, T_in)          padded input slice for this batch tile / group
    w_ref:    (1, cout_g, Kc1_pad)        bf16 im2col weight, bias folded as column K*cin,
                                          columns >= K*cin+1 are zero padding
    o_ref:    (1, cout_g, Bt*T_out)       bf16 lane-packed output (batch-major lanes)
    xcol_ref: (Kc1_pad, Bt*T_out)         bf16 VMEM scratch (im2col panel)
    """
    L = Bt * T_out

    # ---- build the im2col panel: rows [k*cin, (k+1)*cin) of lane block b hold the k-th tap ----
    for b in range(Bt):                      # statically unrolled
        for k in range(K):
            if stride == 1:
                tap = x_ref[b, 0, :, pl.ds(k, T_out)]
            else:
                # TODO(synk): de-interleave time into `stride` phases outside the kernel so every
                # tap is a contiguous lane slice (only hit for downsampling_factor > 1 configs).
                tap = x_ref[b, 0, :, pl.ds(k, T_out, stride=stride)]
            xcol_ref[pl.ds(k * cin, cin), pl.ds(b * T_out, T_out)] = tap.astype(xcol_ref.dtype)

    # ---- constant rows: bias ones-row at K*cin, zeros in the alignment padding rows ----
    # Rewritten every step (one small store) because a first-step-only init is unsafe if the
    # parallel grid axis gets sharded across TensorCores with fresh (uninitialized) scratch.
    pad_rows = Kc1_pad - K * cin
    rid = lax.broadcasted_iota(jnp.int32, (pad_rows, L), 0)
    xcol_ref[pl.ds(K * cin, pad_rows), :] = (rid == 0).astype(xcol_ref.dtype)

    # ---- one MXU matmul over the whole contraction, f32 accumulation ----
    acc = jnp.dot(w_ref[0], xcol_ref[...], preferred_element_type=jnp.float32)
    if apply_tanh:
        acc = jnp.tanh(acc)
    o_ref[0] = acc.astype(o_ref.dtype)


def _avgpool_kernel(xp_ref, sel_ref, o_ref, *, n):
    """AvgPool1d(4, stride=2, pad=1, count_include_pad=False) for one batch element.

    xp_ref: (1, C, T+2)   zero-padded input (single pass; no host-side even/odd gather)
    sel_ref: (n, T_out)   constant selection matrix: sel[2t, t] = 1/count[t]
    o_ref:  (1, C, T_out)
    """
    # stride-1 sliding window sums from contiguous shifted lane slices (VPU)
    s = (xp_ref[0, :, pl.ds(0, n)] + xp_ref[0, :, pl.ds(1, n)]
         + xp_ref[0, :, pl.ds(2, n)] + xp_ref[0, :, pl.ds(3, n)])
    # stride-2 compaction + normalisation as one tiny matmul (guaranteed lowering; avoids
    # strided lane access).  TODO(synk): at audio-scale T, replace the O(T*T_out) selection
    # matrix with a strided lane load / phase-packed layout.
    o_ref[0] = jnp.dot(s, sel_ref[...], preferred_element_type=jnp.float32).astype(o_ref.dtype)


# ----------------------------------------------------------------------------
# Pallas wrappers
# ----------------------------------------------------------------------------
def _pick_batch_tile(B, T_out, lane_target=512):
    """Pack batch items into the RHS lane axis (lane-dense stores, wider MXU columns).

    Only splits the batch when each tile stays 128-lane aligned (BlockSpec constraint);
    otherwise packs the full batch into one tile (block == full array, always legal)."""
    for d in range(1, B + 1):
        if B % d == 0 and d * T_out >= lane_target and (d == B or (d * T_out) % 128 == 0):
            return d
    return B


def conv1d_pallas(x, w_aug, meta):
    """Grouped Conv1d (+optional tanh) over NCW input.

    w_aug: (G_eff, C_out/G_eff, Kc1_pad) bf16 im2col weight; bias folded as column K*C_in/G_eff,
           trailing columns zero-padded.  G_eff == 1 when the layer was collapsed to a dense
           block-diagonal matmul.
    """
    B, C_in, _ = x.shape
    G, cout_g, Kc1_pad = w_aug.shape
    K, stride, pad = meta["k"], meta["stride"], meta["pad"]
    cin_g = C_in // G

    if pad > 0:
        # TODO(synk): fold padding into a halo'd time-tiled index_map / manual DMA for real
        # sequence lengths, to avoid one extra HBM copy of the activation per layer.
        x = jnp.pad(x, ((0, 0), (0, 0), (pad, pad)), mode=meta["pad_mode"])
    T_in = x.shape[-1]
    T_out = (T_in - K) // stride + 1
    xg = x.reshape(B, G, cin_g, T_in)            # split channels into groups (group-major)

    Bt = _pick_batch_tile(B, T_out)
    nbt = B // Bt

    kern = functools.partial(_conv1d_im2col_kernel, K=K, cin=cin_g, stride=stride,
                             T_out=T_out, Bt=Bt, Kc1_pad=Kc1_pad, apply_tanh=meta["tanh"])
    out = pl.pallas_call(
        kern,
        out_shape=jax.ShapeDtypeStruct((G, cout_g, B * T_out), jnp.bfloat16),
        grid=(G, nbt),                            # group OUTER: weight block stays resident
        in_specs=[
            pl.BlockSpec((Bt, 1, cin_g, T_in), lambda g, bt: (bt, g, 0, 0)),
            pl.BlockSpec((1, cout_g, Kc1_pad), lambda g, bt: (g, 0, 0)),
        ],
        out_specs=pl.BlockSpec((1, cout_g, Bt * T_out), lambda g, bt: (g, 0, bt)),
        scratch_shapes=[pltpu.VMEM((Kc1_pad, Bt * T_out), jnp.bfloat16)],
        compiler_params=pltpu.CompilerParams(
            dimension_semantics=("arbitrary", "parallel")),
    )(xg, w_aug)

    # lane-packed (G, cout_g, B*T_out) -> NCW (B, C_out, T_out); tiny layout plumbing in XLA.
    out = out.reshape(G, cout_g, B, T_out).transpose(2, 0, 1, 3).reshape(B, G * cout_g, T_out)
    return out


def avgpool1d_pallas(x):
    """AvgPool1d(4, stride=2, padding=1, count_include_pad=False) over NCW input."""
    B, C, T = x.shape
    T_out = (T + 2 - 4) // 2 + 1
    xp = jnp.pad(x, ((0, 0), (0, 0), (1, 1)))    # zero pad, single HBM pass of x
    Tp = T + 2
    n = Tp - 3                                   # number of stride-1 windows

    # count_include_pad=False: edge windows average over the valid (non-pad) samples only.
    t = jnp.arange(T_out)
    counts = jnp.minimum(2 * t + 3, T) - jnp.maximum(2 * t, 1) + 1
    sel = jnp.zeros((n, T_out), jnp.float32).at[2 * t, t].set(
        1.0 / counts.astype(jnp.float32))

    kern = functools.partial(_avgpool_kernel, n=n)
    return pl.pallas_call(
        kern,
        out_shape=jax.ShapeDtypeStruct((B, C, T_out), x.dtype),
        grid=(B,),
        in_specs=[
            pl.BlockSpec((1, C, Tp), lambda b: (b, 0, 0)),
            pl.BlockSpec((n, T_out), lambda b: (0, 0)),
        ],
        out_specs=pl.BlockSpec((1, C, T_out), lambda b: (b, 0, 0)),
        compiler_params=pltpu.CompilerParams(dimension_semantics=("parallel",)),
    )(xp, sel)


# ----------------------------------------------------------------------------
# Parameter setup (glue)
# ----------------------------------------------------------------------------
def _nlayer_configs(ndf, n_layers, downsampling_factor):
    """Layer configs, following NLayerDiscriminator.__init__ literally."""
    cfgs = [dict(c_in=1, c_out=ndf, k=15, stride=1, pad=7,
                 pad_mode="reflect", groups=1, tanh=True)]
    nf = ndf
    stride = downsampling_factor
    nf_prev = nf
    for _ in range(1, n_layers + 1):
        nf_prev = nf
        nf = min(nf * stride, 1024)
        cfgs.append(dict(c_in=nf_prev, c_out=nf, k=stride * 10 + 1, stride=stride,
                         pad=stride * 5, pad_mode="constant", groups=nf_prev // 4, tanh=True))
    nf_out = min(nf * 2, 1024)
    # faithful to reference: in-channels here are `nf_prev`
    cfgs.append(dict(c_in=nf_prev, c_out=nf_out, k=5, stride=1, pad=2,
                     pad_mode="constant", groups=1, tanh=True))
    cfgs.append(dict(c_in=nf_out, c_out=1, k=3, stride=1, pad=1,
                     pad_mode="constant", groups=1, tanh=False))
    for a, b in zip(cfgs[:-1], cfgs[1:]):
        assert a["c_out"] == b["c_in"], "channel wiring invalid for these hyperparameters"
    return cfgs


def _init_conv(key, cfg):
    c_out, c_in, k, groups = cfg["c_out"], cfg["c_in"], cfg["k"], cfg["groups"]
    cin_g, cout_g = c_in // groups, c_out // groups
    kv, kb = jax.random.split(key)
    # deterministic synthetic init (normal(0, 0.02), matching weights_init's intent)
    v = 0.02 * jax.random.normal(kv, (c_out, cin_g, k), jnp.float32)
    # weight_norm reparameterisation: w = g * v / ||v|| with g initialised to ||v||  ->  w == v
    norm = jnp.sqrt(jnp.sum(v * v, axis=(1, 2), keepdims=True)) + 1e-12
    w = norm * v / norm                                   # (C_out, C_in/groups, K)
    b = 0.01 * jax.random.normal(kb, (c_out,), jnp.float32)

    # collapse small grouped layers into one dense block-diagonal matmul (drops the group grid axis)
    collapse = (k * c_in + 1 <= 256) and (c_out <= 256)
    if collapse:
        G_eff, cin_eff, cout_eff = 1, c_in, c_out
        w_dense = jnp.zeros((c_out, c_in, k), jnp.float32)
        for g in range(groups):
            w_dense = w_dense.at[g * cout_g:(g + 1) * cout_g,
                                 g * cin_g:(g + 1) * cin_g, :].set(
                w[g * cout_g:(g + 1) * cout_g])
        w_g = w_dense.reshape(G_eff, cout_eff, cin_eff, k)
        b_g = b.reshape(G_eff, cout_eff)
    else:
        G_eff, cin_eff, cout_eff = groups, cin_g, cout_g
        w_g = w.reshape(G_eff, cout_eff, cin_eff, k)
        b_g = b.reshape(G_eff, cout_eff)

    # im2col layout per (effective) group: w_im[g, o, k*cin_eff + c] = w_g[g, o, c, k];
    # bias folded as the last live column; contraction zero-padded to a multiple of 16 (bf16 tiles).
    Kc1 = k * cin_eff + 1
    Kc1_pad = -(-Kc1 // 16) * 16
    w_im = jnp.transpose(w_g, (0, 1, 3, 2)).reshape(G_eff, cout_eff, k * cin_eff)
    w_aug = jnp.concatenate([w_im, b_g[..., None]], axis=-1)
    w_aug = jnp.pad(w_aug, ((0, 0), (0, 0), (0, Kc1_pad - Kc1))).astype(jnp.bfloat16)

    meta = dict(k=k, stride=cfg["stride"], pad=cfg["pad"], pad_mode=cfg["pad_mode"],
                tanh=cfg["tanh"])
    return dict(cfg=cfg, meta=meta, w_aug=w_aug, w=w, b=b)


def init_discriminator_params(key, num_D, ndf, n_layers, downsampling_factor):
    cfgs = _nlayer_configs(ndf, n_layers, downsampling_factor)
    params = []
    for _ in range(num_D):
        disc = []
        for cfg in cfgs:
            key, sub = jax.random.split(key)
            disc.append(_init_conv(sub, cfg))
        params.append(disc)
    return params


# ----------------------------------------------------------------------------
# Forward pass (mirrors Discriminator.forward / NLayerDiscriminator.forward)
# ----------------------------------------------------------------------------
def discriminator_forward(x, params):
    results = []
    for disc in params:
        h = x
        disc_results = []
        for layer in disc:
            h = conv1d_pallas(h, layer["w_aug"], layer["meta"])
            disc_results.append(h)
        results.append(disc_results)
        x = avgpool1d_pallas(x)        # downsample between scales (last one unused, as in torch)
    return results


# ----------------------------------------------------------------------------
# Pure-JAX reference (bf16-storage matched) for correctness checking
# ----------------------------------------------------------------------------
def _ref_conv(h, layer):
    cfg, w, b = layer["cfg"], layer["w"], layer["b"]
    wq = w.astype(jnp.bfloat16).astype(jnp.float32)       # mirror bf16 weight storage
    bq = b.astype(jnp.bfloat16).astype(jnp.float32)
    hq = h.astype(jnp.bfloat16).astype(jnp.float32)       # mirror bf16 activation storage
    if cfg["pad_mode"] == "reflect":
        hq = jnp.pad(hq, ((0, 0), (0, 0), (cfg["pad"], cfg["pad"])), mode="reflect")
        pads = (0, 0)
    else:
        pads = (cfg["pad"], cfg["pad"])
    y = lax.conv_general_dilated(hq, wq, (cfg["stride"],), [pads],
                                 dimension_numbers=("NCH", "OIH", "NCH"),
                                 feature_group_count=cfg["groups"],
                                 precision=lax.Precision.HIGHEST)
    y = y + bq[None, :, None]
    return jnp.tanh(y) if cfg["tanh"] else y


def _ref_avgpool(x):
    B, C, T = x.shape
    T_out = (T + 2 - 4) // 2 + 1
    cols = []
    for t in range(T_out):
        lo, hi = max(0, 2 * t - 1), min(T, 2 * t + 3)
        cols.append(jnp.mean(x[:, :, lo:hi], axis=-1))
    return jnp.stack(cols, axis=-1)


def _ref_forward(x, params):
    results = []
    for disc in params:
        h = x
        outs = []
        for layer in disc:
            h = _ref_conv(h, layer)
            outs.append(h)
        results.append(outs)
        x = _ref_avgpool(x)
    return results


# ----------------------------------------------------------------------------
if __name__ == "__main__":
    num_D, ndf, n_layers, downsampling_factor = 2, 8, 2, 1
    B, T = 2, 64

    key = jax.random.PRNGKey(0)
    key, kx = jax.random.split(key)
    x = jax.random.normal(kx, (B, 1, T), jnp.float32)

    params = init_discriminator_params(key, num_D, ndf, n_layers, downsampling_factor)
    results = discriminator_forward(x, params)
    jax.block_until_ready(results)

    # shape / finiteness sanity checks (disc 0 at T=64, disc 1 at T=32)
    expected_ch = [ndf, ndf, ndf, 2 * ndf, 1]
    for d, disc_res in enumerate(results):
        t_d = T // (2 ** d)
        for out, ch in zip(disc_res, expected_ch):
            assert out.shape == (B, ch, t_d), (out.shape, (B, ch, t_d))
            assert bool(jnp.all(jnp.isfinite(out)))

    # numerical check against a pure-JAX reference (tolerances cover bf16 storage rounding)
    ref = _ref_forward(x, params)
    for disc_res, disc_ref in zip(results, ref):
        for out, out_ref in zip(disc_res, disc_ref):
            assert bool(jnp.allclose(out.astype(jnp.float32), out_ref,
                                     atol=3e-2, rtol=5e-2)), "conv mismatch vs reference"

    # pool check; tolerance covers the possibility of reduced-precision MXU passes for the tiny
    # f32 compaction matmul inside the kernel.
    pooled = avgpool1d_pallas(x)
    assert bool(jnp.allclose(pooled, _ref_avgpool(x), atol=1e-2, rtol=1e-2)), "pool mismatch"

    print("KERNEL_OK")
</pallas_src>

<mosaic_0001>
module attributes {stable_mosaic.version = 11 : i64} {
  func.func @_conv1d_im2col_kernel(%arg0: i32, %arg1: i32, %arg2: memref<2x1x1x78xf32, #tpu.memory_space<vmem>>, %arg3: memref<1x8x16xbf16, #tpu.memory_space<vmem>>, %arg4: memref<1x8x128xbf16, #tpu.memory_space<vmem>>, %arg5: memref<16x128xbf16, #tpu.memory_space<vmem>>) attributes {dimension_semantics = [#tpu.dimension_semantics<arbitrary>, #tpu.dimension_semantics<parallel>], iteration_bounds = array<i64: 1, 1>, scalar_prefetch = 0 : i64, scratch_operands = 1 : i64, tpu.core_type = #tpu.core_type<tc>, window_params = [{transform_indices = @transform_0, window_bounds = array<i64: 2, 1, 1, 78>}, {transform_indices = @transform_1, window_bounds = array<i64: 1, 8, 16>}, {transform_indices = @transform_2, window_bounds = array<i64: 1, 8, 128>}]} {
    %c0 = arith.constant 0 : index
    %c0_0 = arith.constant 0 : index
    %c0_1 = arith.constant 0 : index
    %c0_2 = arith.constant 0 : index
    %0 = vector.load %arg2[%c0, %c0_0, %c0_1, %c0_2] : memref<2x1x1x78xf32, #tpu.memory_space<vmem>>, vector<1x1x1x64xf32>
    %1 = vector.shape_cast %0 : vector<1x1x1x64xf32> to vector<1x64xf32>
    %2 = arith.truncf %1 : vector<1x64xf32> to vector<1x64xbf16>
    %c0_3 = arith.constant 0 : index
    %c0_4 = arith.constant 0 : index
    %3 = vector.load %arg5[%c0_3, %c0_4] : memref<16x128xbf16, #tpu.memory_space<vmem>>, vector<1x64xbf16>
    tpu.vector_store %arg5[%c0_3, %c0_4], %2 {strides = array<i32>} : memref<16x128xbf16, #tpu.memory_space<vmem>>, vector<1x64xbf16>,
    %c0_5 = arith.constant 0 : index
    %c0_6 = arith.constant 0 : index
    %c0_7 = arith.constant 0 : index
    %c1 = arith.constant 1 : index
    %4 = vector.load %arg2[%c0_5, %c0_6, %c0_7, %c1] : memref<2x1x1x78xf32, #tpu.memory_space<vmem>>, vector<1x1x1x64xf32>
    %5 = vector.shape_cast %4 : vector<1x1x1x64xf32> to vector<1x64xf32>
    %6 = arith.truncf %5 : vector<1x64xf32> to vector<1x64xbf16>
    %c1_8 = arith.constant 1 : index
    %c0_9 = arith.constant 0 : index
    %7 = vector.load %arg5[%c1_8, %c0_9] : memref<16x128xbf16, #tpu.memory_space<vmem>>, vector<1x64xbf16>
    tpu.vector_store %arg5[%c1_8, %c0_9], %6 {strides = array<i32>} : memref<16x128xbf16, #tpu.memory_space<vmem>>, vector<1x64xbf16>,
    %c0_10 = arith.constant 0 : index
    %c0_11 = arith.constant 0 : index
    %c0_12 = arith.constant 0 : index
    %c2 = arith.constant 2 : index
    %8 = vector.load %arg2[%c0_10, %c0_11, %c0_12, %c2] : memref<2x1x1x78xf32, #tpu.memory_space<vmem>>, vector<1x1x1x64xf32>
    %9 = vector.shape_cast %8 : vector<1x1x1x64xf32> to vector<1x64xf32>
    %10 = arith.truncf %9 : vector<1x64xf32> to vector<1x64xbf16>
    %c2_13 = arith.constant 2 : index
    %c0_14 = arith.constant 0 : index
    %11 = vector.load %arg5[%c2_13, %c0_14] : memref<16x128xbf16, #tpu.memory_space<vmem>>, vector<1x64xbf16>
    tpu.vector_store %arg5[%c2_13, %c0_14], %10 {strides = array<i32>} : memref<16x128xbf16, #tpu.memory_space<vmem>>, vector<1x64xbf16>,
    %c0_15 = arith.constant 0 : index
    %c0_16 = arith.constant 0 : index
    %c0_17 = arith.constant 0 : index
    %c3 = arith.constant 3 : index
    %12 = vector.load %arg2[%c0_15, %c0_16, %c0_17, %c3] : memref<2x1x1x78xf32, #tpu.memory_space<vmem>>, vector<1x1x1x64xf32>
    %13 = vector.shape_cast %12 : vector<1x1x1x64xf32> to vector<1x64xf32>
    %14 = arith.truncf %13 : vector<1x64xf32> to vector<1x64xbf16>
    %c3_18 = arith.constant 3 : index
    %c0_19 = arith.constant 0 : index
    %15 = vector.load %arg5[%c3_18, %c0_19] : memref<16x128xbf16, #tpu.memory_space<vmem>>, vector<1x64xbf16>
    tpu.vector_store %arg5[%c3_18, %c0_19], %14 {strides = array<i32>} : memref<16x128xbf16, #tpu.memory_space<vmem>>, vector<1x64xbf16>,
    %c0_20 = arith.constant 0 : index
    %c0_21 = arith.constant 0 : index
    %c0_22 = arith.constant 0 : index
    %c4 = arith.constant 4 : index
    %16 = vector.load %arg2[%c0_20, %c0_21, %c0_22, %c4] : memref<2x1x1x78xf32, #tpu.memory_space<vmem>>, vector<1x1x1x64xf32>
    %17 = vector.shape_cast %16 : vector<1x1x1x64xf32> to vector<1x64xf32>
    %18 = arith.truncf %17 : vector<1x64xf32> to vector<1x64xbf16>
    %c4_23 = arith.constant 4 : index
    %c0_24 = arith.constant 0 : index
    %19 = vector.load %arg5[%c4_23, %c0_24] : memref<16x128xbf16, #tpu.memory_space<vmem>>, vector<1x64xbf16>
    tpu.vector_store %arg5[%c4_23, %c0_24], %18 {strides = array<i32>} : memref<16x128xbf16, #tpu.memory_space<vmem>>, vector<1x64xbf16>,
    %c0_25 = arith.constant 0 : index
    %c0_26 = arith.constant 0 : index
    %c0_27 = arith.constant 0 : index
    %c5 = arith.constant 5 : index
    %20 = vector.load %arg2[%c0_25, %c0_26, %c0_27, %c5] : memref<2x1x1x78xf32, #tpu.memory_space<vmem>>, vector<1x1x1x64xf32>
    %21 = vector.shape_cast %20 : vector<1x1x1x64xf32> to vector<1x64xf32>
    %22 = arith.truncf %21 : vector<1x64xf32> to vector<1x64xbf16>
    %c5_28 = arith.constant 5 : index
    %c0_29 = arith.constant 0 : index
    %23 = vector.load %arg5[%c5_28, %c0_29] : memref<16x128xbf16, #tpu.memory_space<vmem>>, vector<1x64xbf16>
    tpu.vector_store %arg5[%c5_28, %c0_29], %22 {strides = array<i32>} : memref<16x128xbf16, #tpu.memory_space<vmem>>, vector<1x64xbf16>,
    %c0_30 = arith.constant 0 : index
    %c0_31 = arith.constant 0 : index
    %c0_32 = arith.constant 0 : index
    %c6 = arith.constant 6 : index
    %24 = vector.load %arg2[%c0_30, %c0_31, %c0_32, %c6] : memref<2x1x1x78xf32, #tpu.memory_space<vmem>>, vector<1x1x1x64xf32>
    %25 = vector.shape_cast %24 : vector<1x1x1x64xf32> to vector<1x64xf32>
    %26 = arith.truncf %25 : vector<1x64xf32> to vector<1x64xbf16>
    %c6_33 = arith.constant 6 : index
    %c0_34 = arith.constant 0 : index
    %27 = vector.load %arg5[%c6_33, %c0_34] : memref<16x128xbf16, #tpu.memory_space<vmem>>, vector<1x64xbf16>
    tpu.vector_store %arg5[%c6_33, %c0_34], %26 {strides = array<i32>} : memref<16x128xbf16, #tpu.memory_space<vmem>>, vector<1x64xbf16>,
    %c0_35 = arith.constant 0 : index
    %c0_36 = arith.constant 0 : index
    %c0_37 = arith.constant 0 : index
    %c7 = arith.constant 7 : index
    %28 = vector.load %arg2[%c0_35, %c0_36, %c0_37, %c7] : memref<2x1x1x78xf32, #tpu.memory_space<vmem>>, vector<1x1x1x64xf32>
    %29 = vector.shape_cast %28 : vector<1x1x1x64xf32> to vector<1x64xf32>
    %30 = arith.truncf %29 : vector<1x64xf32> to vector<1x64xbf16>
    %c7_38 = arith.constant 7 : index
    %c0_39 = arith.constant 0 : index
    %31 = vector.load %arg5[%c7_38, %c0_39] : memref<16x128xbf16, #tpu.memory_space<vmem>>, vector<1x64xbf16>
    tpu.vector_store %arg5[%c7_38, %c0_39], %30 {strides = array<i32>} : memref<16x128xbf16, #tpu.memory_space<vmem>>, vector<1x64xbf16>,
    %c0_40 = arith.constant 0 : index
    %c0_41 = arith.constant 0 : index
    %c0_42 = arith.constant 0 : index
    %c8 = arith.constant 8 : index
    %32 = vector.load %arg2[%c0_40, %c0_41, %c0_42, %c8] : memref<2x1x1x78xf32, #tpu.memory_space<vmem>>, vector<1x1x1x64xf32>
    %33 = vector.shape_cast %32 : vector<1x1x1x64xf32> to vector<1x64xf32>
    %34 = arith.truncf %33 : vector<1x64xf32> to vector<1x64xbf16>
    %c8_43 = arith.constant 8 : index
    %c0_44 = arith.constant 0 : index
    %35 = vector.load %arg5[%c8_43, %c0_44] : memref<16x128xbf16, #tpu.memory_space<vmem>>, vector<1x64xbf16>
    tpu.vector_store %arg5[%c8_43, %c0_44], %34 {strides = array<i32>} : memref<16x128xbf16, #tpu.memory_space<vmem>>, vector<1x64xbf16>,
    %c0_45 = arith.constant 0 : index
    %c0_46 = arith.constant 0 : index
    %c0_47 = arith.constant 0 : index
    %c9 = arith.constant 9 : index
    %36 = vector.load %arg2[%c0_45, %c0_46, %c0_47, %c9] : memref<2x1x1x78xf32, #tpu.memory_space<vmem>>, vector<1x1x1x64xf32>
    %37 = vector.shape_cast %36 : vector<1x1x1x64xf32> to vector<1x64xf32>
    %38 = arith.truncf %37 : vector<1x64xf32> to vector<1x64xbf16>
    %c9_48 = arith.constant 9 : index
    %c0_49 = arith.constant 0 : index
    %39 = vector.load %arg5[%c9_48, %c0_49] : memref<16x128xbf16, #tpu.memory_space<vmem>>, vector<1x64xbf16>
    tpu.vector_store %arg5[%c9_48, %c0_49], %38 {strides = array<i32>} : memref<16x128xbf16, #tpu.memory_space<vmem>>, vector<1x64xbf16>,
    %c0_50 = arith.constant 0 : index
    %c0_51 = arith.constant 0 : index
    %c0_52 = arith.constant 0 : index
    %c10 = arith.constant 10 : index
    %40 = vector.load %arg2[%c0_50, %c0_51, %c0_52, %c10] : memref<2x1x1x78xf32, #tpu.memory_space<vmem>>, vector<1x1x1x64xf32>
    %41 = vector.shape_cast %40 : vector<1x1x1x64xf32> to vector<1x64xf32>
    %42 = arith.truncf %41 : vector<1x64xf32> to vector<1x64xbf16>
    %c10_53 = arith.constant 10 : index
    %c0_54 = arith.constant 0 : index
    %43 = vector.load %arg5[%c10_53, %c0_54] : memref<16x128xbf16, #tpu.memory_space<vmem>>, vector<1x64xbf16>
    tpu.vector_store %arg5[%c10_53, %c0_54], %42 {strides = array<i32>} : memref<16x128xbf16, #tpu.memory_space<vmem>>, vector<1x64xbf16>,
    %c0_55 = arith.constant 0 : index
    %c0_56 = arith.constant 0 : index
    %c0_57 = arith.constant 0 : index
    %c11 = arith.constant 11 : index
    %44 = vector.load %arg2[%c0_55, %c0_56, %c0_57, %c11] : memref<2x1x1x78xf32, #tpu.memory_space<vmem>>, vector<1x1x1x64xf32>
    %45 = vector.shape_cast %44 : vector<1x1x1x64xf32> to vector<1x64xf32>
    %46 = arith.truncf %45 : vector<1x64xf32> to vector<1x64xbf16>
    %c11_58 = arith.constant 11 : index
    %c0_59 = arith.constant 0 : index
    %47 = vector.load %arg5[%c11_58, %c0_59] : memref<16x128xbf16, #tpu.memory_space<vmem>>, vector<1x64xbf16>
    tpu.vector_store %arg5[%c11_58, %c0_59], %46 {strides = array<i32>} : memref<16x128xbf16, #tpu.memory_space<vmem>>, vector<1x64xbf16>,
    %c0_60 = arith.constant 0 : index
    %c0_61 = arith.constant 0 : index
    %c0_62 = arith.constant 0 : index
    %c12 = arith.constant 12 : index
    %48 = vector.load %arg2[%c0_60, %c0_61, %c0_62, %c12] : memref<2x1x1x78xf32, #tpu.memory_space<vmem>>, vector<1x1x1x64xf32>
    %49 = vector.shape_cast %48 : vector<1x1x1x64xf32> to vector<1x64xf32>
    %50 = arith.truncf %49 : vector<1x64xf32> to vector<1x64xbf16>
    %c12_63 = arith.constant 12 : index
    %c0_64 = arith.constant 0 : index
    %51 = vector.load %arg5[%c12_63, %c0_64] : memref<16x128xbf16, #tpu.memory_space<vmem>>, vector<1x64xbf16>
    tpu.vector_store %arg5[%c12_63, %c0_64], %50 {strides = array<i32>} : memref<16x128xbf16, #tpu.memory_space<vmem>>, vector<1x64xbf16>,
    %c0_65 = arith.constant 0 : index
    %c0_66 = arith.constant 0 : index
    %c0_67 = arith.constant 0 : index
    %c13 = arith.constant 13 : index
    %52 = vector.load %arg2[%c0_65, %c0_66, %c0_67, %c13] : memref<2x1x1x78xf32, #tpu.memory_space<vmem>>, vector<1x1x1x64xf32>
    %53 = vector.shape_cast %52 : vector<1x1x1x64xf32> to vector<1x64xf32>
    %54 = arith.truncf %53 : vector<1x64xf32> to vector<1x64xbf16>
    %c13_68 = arith.constant 13 : index
    %c0_69 = arith.constant 0 : index
    %55 = vector.load %arg5[%c13_68, %c0_69] : memref<16x128xbf16, #tpu.memory_space<vmem>>, vector<1x64xbf16>
    tpu.vector_store %arg5[%c13_68, %c0_69], %54 {strides = array<i32>} : memref<16x128xbf16, #tpu.memory_space<vmem>>, vector<1x64xbf16>,
    %c0_70 = arith.constant 0 : index
    %c0_71 = arith.constant 0 : index
    %c0_72 = arith.constant 0 : index
    %c14 = arith.constant 14 : index
    %56 = vector.load %arg2[%c0_70, %c0_71, %c0_72, %c14] : memref<2x1x1x78xf32, #tpu.memory_space<vmem>>, vector<1x1x1x64xf32>
    %57 = vector.shape_cast %56 : vector<1x1x1x64xf32> to vector<1x64xf32>
    %58 = arith.truncf %57 : vector<1x64xf32> to vector<1x64xbf16>
    %c14_73 = arith.constant 14 : index
    %c0_74 = arith.constant 0 : index
    %59 = vector.load %arg5[%c14_73, %c0_74] : memref<16x128xbf16, #tpu.memory_space<vmem>>, vector<1x64xbf16>
    tpu.vector_store %arg5[%c14_73, %c0_74], %58 {strides = array<i32>} : memref<16x128xbf16, #tpu.memory_space<vmem>>, vector<1x64xbf16>,
    %c1_75 = arith.constant 1 : index
    %c0_76 = arith.constant 0 : index
    %c0_77 = arith.constant 0 : index
    %c0_78 = arith.constant 0 : index
    %60 = vector.load %arg2[%c1_75, %c0_76, %c0_77, %c0_78] : memref<2x1x1x78xf32, #tpu.memory_space<vmem>>, vector<1x1x1x64xf32>
    %61 = vector.shape_cast %60 : vector<1x1x1x64xf32> to vector<1x64xf32>
    %62 = arith.truncf %61 : vector<1x64xf32> to vector<1x64xbf16>
    %c0_79 = arith.constant 0 : index
    %c64 = arith.constant 64 : index
    %63 = vector.load %arg5[%c0_79, %c64] : memref<16x128xbf16, #tpu.memory_space<vmem>>, vector<1x64xbf16>
    tpu.vector_store %arg5[%c0_79, %c64], %62 {strides = array<i32>} : memref<16x128xbf16, #tpu.memory_space<vmem>>, vector<1x64xbf16>,
    %c1_80 = arith.constant 1 : index
    %c0_81 = arith.constant 0 : index
    %c0_82 = arith.constant 0 : index
    %c1_83 = arith.constant 1 : index
    %64 = vector.load %arg2[%c1_80, %c0_81, %c0_82, %c1_83] : memref<2x1x1x78xf32, #tpu.memory_space<vmem>>, vector<1x1x1x64xf32>
    %65 = vector.shape_cast %64 : vector<1x1x1x64xf32> to vector<1x64xf32>
    %66 = arith.truncf %65 : vector<1x64xf32> to vector<1x64xbf16>
    %c1_84 = arith.constant 1 : index
    %c64_85 = arith.constant 64 : index
    %67 = vector.load %arg5[%c1_84, %c64_85] : memref<16x128xbf16, #tpu.memory_space<vmem>>, vector<1x64xbf16>
    tpu.vector_store %arg5[%c1_84, %c64_85], %66 {strides = array<i32>} : memref<16x128xbf16, #tpu.memory_space<vmem>>, vector<1x64xbf16>,
    %c1_86 = arith.constant 1 : index
    %c0_87 = arith.constant 0 : index
    %c0_88 = arith.constant 0 : index
    %c2_89 = arith.constant 2 : index
    %68 = vector.load %arg2[%c1_86, %c0_87, %c0_88, %c2_89] : memref<2x1x1x78xf32, #tpu.memory_space<vmem>>, vector<1x1x1x64xf32>
    %69 = vector.shape_cast %68 : vector<1x1x1x64xf32> to vector<1x64xf32>
    %70 = arith.truncf %69 : vector<1x64xf32> to vector<1x64xbf16>
    %c2_90 = arith.constant 2 : index
    %c64_91 = arith.constant 64 : index
    %71 = vector.load %arg5[%c2_90, %c64_91] : memref<16x128xbf16, #tpu.memory_space<vmem>>, vector<1x64xbf16>
    tpu.vector_store %arg5[%c2_90, %c64_91], %70 {strides = array<i32>} : memref<16x128xbf16, #tpu.memory_space<vmem>>, vector<1x64xbf16>,
    %c1_92 = arith.constant 1 : index
    %c0_93 = arith.constant 0 : index
    %c0_94 = arith.constant 0 : index
    %c3_95 = arith.constant 3 : index
    %72 = vector.load %arg2[%c1_92, %c0_93, %c0_94, %c3_95] : memref<2x1x1x78xf32, #tpu.memory_space<vmem>>, vector<1x1x1x64xf32>
    %73 = vector.shape_cast %72 : vector<1x1x1x64xf32> to vector<1x64xf32>
    %74 = arith.truncf %73 : vector<1x64xf32> to vector<1x64xbf16>
    %c3_96 = arith.constant 3 : index
    %c64_97 = arith.constant 64 : index
    %75 = vector.load %arg5[%c3_96, %c64_97] : memref<16x128xbf16, #tpu.memory_space<vmem>>, vector<1x64xbf16>
    tpu.vector_store %arg5[%c3_96, %c64_97], %74 {strides = array<i32>} : memref<16x128xbf16, #tpu.memory_space<vmem>>, vector<1x64xbf16>,
    %c1_98 = arith.constant 1 : index
    %c0_99 = arith.constant 0 : index
    %c0_100 = arith.constant 0 : index
    %c4_101 = arith.constant 4 : index
    %76 = vector.load %arg2[%c1_98, %c0_99, %c0_100, %c4_101] : memref<2x1x1x78xf32, #tpu.memory_space<vmem>>, vector<1x1x1x64xf32>
    %77 = vector.shape_cast %76 : vector<1x1x1x64xf32> to vector<1x64xf32>
    %78 = arith.truncf %77 : vector<1x64xf32> to vector<1x64xbf16>
    %c4_102 = arith.constant 4 : index
    %c64_103 = arith.constant 64 : index
    %79 = vector.load %arg5[%c4_102, %c64_103] : memref<16x128xbf16, #tpu.memory_space<vmem>>, vector<1x64xbf16>
    tpu.vector_store %arg5[%c4_102, %c64_103], %78 {strides = array<i32>} : memref<16x128xbf16, #tpu.memory_space<vmem>>, vector<1x64xbf16>,
    %c1_104 = arith.constant 1 : index
    %c0_105 = arith.constant 0 : index
    %c0_106 = arith.constant 0 : index
    %c5_107 = arith.constant 5 : index
    %80 = vector.load %arg2[%c1_104, %c0_105, %c0_106, %c5_107] : memref<2x1x1x78xf32, #tpu.memory_space<vmem>>, vector<1x1x1x64xf32>
    %81 = vector.shape_cast %80 : vector<1x1x1x64xf32> to vector<1x64xf32>
    %82 = arith.truncf %81 : vector<1x64xf32> to vector<1x64xbf16>
    %c5_108 = arith.constant 5 : index
    %c64_109 = arith.constant 64 : index
    %83 = vector.load %arg5[%c5_108, %c64_109] : memref<16x128xbf16, #tpu.memory_space<vmem>>, vector<1x64xbf16>
    tpu.vector_store %arg5[%c5_108, %c64_109], %82 {strides = array<i32>} : memref<16x128xbf16, #tpu.memory_space<vmem>>, vector<1x64xbf16>,
    %c1_110 = arith.constant 1 : index
    %c0_111 = arith.constant 0 : index
    %c0_112 = arith.constant 0 : index
    %c6_113 = arith.constant 6 : index
    %84 = vector.load %arg2[%c1_110, %c0_111, %c0_112, %c6_113] : memref<2x1x1x78xf32, #tpu.memory_space<vmem>>, vector<1x1x1x64xf32>
    %85 = vector.shape_cast %84 : vector<1x1x1x64xf32> to vector<1x64xf32>
    %86 = arith.truncf %85 : vector<1x64xf32> to vector<1x64xbf16>
    %c6_114 = arith.constant 6 : index
    %c64_115 = arith.constant 64 : index
    %87 = vector.load %arg5[%c6_114, %c64_115] : memref<16x128xbf16, #tpu.memory_space<vmem>>, vector<1x64xbf16>
    tpu.vector_store %arg5[%c6_114, %c64_115], %86 {strides = array<i32>} : memref<16x128xbf16, #tpu.memory_space<vmem>>, vector<1x64xbf16>,
    %c1_116 = arith.constant 1 : index
    %c0_117 = arith.constant 0 : index
    %c0_118 = arith.constant 0 : index
    %c7_119 = arith.constant 7 : index
    %88 = vector.load %arg2[%c1_116, %c0_117, %c0_118, %c7_119] : memref<2x1x1x78xf32, #tpu.memory_space<vmem>>, vector<1x1x1x64xf32>
    %89 = vector.shape_cast %88 : vector<1x1x1x64xf32> to vector<1x64xf32>
    %90 = arith.truncf %89 : vector<1x64xf32> to vector<1x64xbf16>
    %c7_120 = arith.constant 7 : index
    %c64_121 = arith.constant 64 : index
    %91 = vector.load %arg5[%c7_120, %c64_121] : memref<16x128xbf16, #tpu.memory_space<vmem>>, vector<1x64xbf16>
    tpu.vector_store %arg5[%c7_120, %c64_121], %90 {strides = array<i32>} : memref<16x128xbf16, #tpu.memory_space<vmem>>, vector<1x64xbf16>,
    %c1_122 = arith.constant 1 : index
    %c0_123 = arith.constant 0 : index
    %c0_124 = arith.constant 0 : index
    %c8_125 = arith.constant 8 : index
    %92 = vector.load %arg2[%c1_122, %c0_123, %c0_124, %c8_125] : memref<2x1x1x78xf32, #tpu.memory_space<vmem>>, vector<1x1x1x64xf32>
    %93 = vector.shape_cast %92 : vector<1x1x1x64xf32> to vector<1x64xf32>
    %94 = arith.truncf %93 : vector<1x64xf32> to vector<1x64xbf16>
    %c8_126 = arith.constant 8 : index
    %c64_127 = arith.constant 64 : index
    %95 = vector.load %arg5[%c8_126, %c64_127] : memref<16x128xbf16, #tpu.memory_space<vmem>>, vector<1x64xbf16>
    tpu.vector_store %arg5[%c8_126, %c64_127], %94 {strides = array<i32>} : memref<16x128xbf16, #tpu.memory_space<vmem>>, vector<1x64xbf16>,
    %c1_128 = arith.constant 1 : index
    %c0_129 = arith.constant 0 : index
    %c0_130 = arith.constant 0 : index
    %c9_131 = arith.constant 9 : index
    %96 = vector.load %arg2[%c1_128, %c0_129, %c0_130, %c9_131] : memref<2x1x1x78xf32, #tpu.memory_space<vmem>>, vector<1x1x1x64xf32>
    %97 = vector.shape_cast %96 : vector<1x1x1x64xf32> to vector<1x64xf32>
    %98 = arith.truncf %97 : vector<1x64xf32> to vector<1x64xbf16>
    %c9_132 = arith.constant 9 : index
    %c64_133 = arith.constant 64 : index
    %99 = vector.load %arg5[%c9_132, %c64_133] : memref<16x128xbf16, #tpu.memory_space<vmem>>, vector<1x64xbf16>
    tpu.vector_store %arg5[%c9_132, %c64_133], %98 {strides = array<i32>} : memref<16x128xbf16, #tpu.memory_space<vmem>>, vector<1x64xbf16>,
    %c1_134 = arith.constant 1 : index
    %c0_135 = arith.constant 0 : index
    %c0_136 = arith.constant 0 : index
    %c10_137 = arith.constant 10 : index
    %100 = vector.load %arg2[%c1_134, %c0_135, %c0_136, %c10_137] : memref<2x1x1x78xf32, #tpu.memory_space<vmem>>, vector<1x1x1x64xf32>
    %101 = vector.shape_cast %100 : vector<1x1x1x64xf32> to vector<1x64xf32>
    %102 = arith.truncf %101 : vector<1x64xf32> to vector<1x64xbf16>
    %c10_138 = arith.constant 10 : index
    %c64_139 = arith.constant 64 : index
    %103 = vector.load %arg5[%c10_138, %c64_139] : memref<16x128xbf16, #tpu.memory_space<vmem>>, vector<1x64xbf16>
    tpu.vector_store %arg5[%c10_138, %c64_139], %102 {strides = array<i32>} : memref<16x128xbf16, #tpu.memory_space<vmem>>, vector<1x64xbf16>,
    %c1_140 = arith.constant 1 : index
    %c0_141 = arith.constant 0 : index
    %c0_142 = arith.constant 0 : index
    %c11_143 = arith.constant 11 : index
    %104 = vector.load %arg2[%c1_140, %c0_141, %c0_142, %c11_143] : memref<2x1x1x78xf32, #tpu.memory_space<vmem>>, vector<1x1x1x64xf32>
    %105 = vector.shape_cast %104 : vector<1x1x1x64xf32> to vector<1x64xf32>
    %106 = arith.truncf %105 : vector<1x64xf32> to vector<1x64xbf16>
    %c11_144 = arith.constant 11 : index
    %c64_145 = arith.constant 64 : index
    %107 = vector.load %arg5[%c11_144, %c64_145] : memref<16x128xbf16, #tpu.memory_space<vmem>>, vector<1x64xbf16>
    tpu.vector_store %arg5[%c11_144, %c64_145], %106 {strides = array<i32>} : memref<16x128xbf16, #tpu.memory_space<vmem>>, vector<1x64xbf16>,
    %c1_146 = arith.constant 1 : index
    %c0_147 = arith.constant 0 : index
    %c0_148 = arith.constant 0 : index
    %c12_149 = arith.constant 12 : index
    %108 = vector.load %arg2[%c1_146, %c0_147, %c0_148, %c12_149] : memref<2x1x1x78xf32, #tpu.memory_space<vmem>>, vector<1x1x1x64xf32>
    %109 = vector.shape_cast %108 : vector<1x1x1x64xf32> to vector<1x64xf32>
    %110 = arith.truncf %109 : vector<1x64xf32> to vector<1x64xbf16>
    %c12_150 = arith.constant 12 : index
    %c64_151 = arith.constant 64 : index
    %111 = vector.load %arg5[%c12_150, %c64_151] : memref<16x128xbf16, #tpu.memory_space<vmem>>, vector<1x64xbf16>
    tpu.vector_store %arg5[%c12_150, %c64_151], %110 {strides = array<i32>} : memref<16x128xbf16, #tpu.memory_space<vmem>>, vector<1x64xbf16>,
    %c1_152 = arith.constant 1 : index
    %c0_153 = arith.constant 0 : index
    %c0_154 = arith.constant 0 : index
    %c13_155 = arith.constant 13 : index
    %112 = vector.load %arg2[%c1_152, %c0_153, %c0_154, %c13_155] : memref<2x1x1x78xf32, #tpu.memory_space<vmem>>, vector<1x1x1x64xf32>
    %113 = vector.shape_cast %112 : vector<1x1x1x64xf32> to vector<1x64xf32>
    %114 = arith.truncf %113 : vector<1x64xf32> to vector<1x64xbf16>
    %c13_156 = arith.constant 13 : index
    %c64_157 = arith.constant 64 : index
    %115 = vector.load %arg5[%c13_156, %c64_157] : memref<16x128xbf16, #tpu.memory_space<vmem>>, vector<1x64xbf16>
    tpu.vector_store %arg5[%c13_156, %c64_157], %114 {strides = array<i32>} : memref<16x128xbf16, #tpu.memory_space<vmem>>, vector<1x64xbf16>,
    %c1_158 = arith.constant 1 : index
    %c0_159 = arith.constant 0 : index
    %c0_160 = arith.constant 0 : index
    %c14_161 = arith.constant 14 : index
    %116 = vector.load %arg2[%c1_158, %c0_159, %c0_160, %c14_161] : memref<2x1x1x78xf32, #tpu.memory_space<vmem>>, vector<1x1x1x64xf32>
    %117 = vector.shape_cast %116 : vector<1x1x1x64xf32> to vector<1x64xf32>
    %118 = arith.truncf %117 : vector<1x64xf32> to vector<1x64xbf16>
    %c14_162 = arith.constant 14 : index
    %c64_163 = arith.constant 64 : index
    %119 = vector.load %arg5[%c14_162, %c64_163] : memref<16x128xbf16, #tpu.memory_space<vmem>>, vector<1x64xbf16>
    tpu.vector_store %arg5[%c14_162, %c64_163], %118 {strides = array<i32>} : memref<16x128xbf16, #tpu.memory_space<vmem>>, vector<1x64xbf16>,
    %120 = tpu.iota {dimensions = array<i32: 0>} : vector<1x128xi32>
    %c0_i32 = arith.constant 0 : i32
    %121 = vector.broadcast %c0_i32 : i32 to vector<1x128xi32>
    %122 = arith.cmpi eq, %120, %121 : vector<1x128xi32>
    %123 = arith.extui %122 : vector<1x128xi1> to vector<1x128xi32>
    %124 = arith.sitofp %123 : vector<1x128xi32> to vector<1x128xf32>
    %125 = arith.truncf %124 : vector<1x128xf32> to vector<1x128xbf16>
    %c15 = arith.constant 15 : index
    %c0_164 = arith.constant 0 : index
    %126 = vector.load %arg5[%c15, %c0_164] : memref<16x128xbf16, #tpu.memory_space<vmem>>, vector<1x128xbf16>
    tpu.vector_store %arg5[%c15, %c0_164], %125 {strides = array<i32>} : memref<16x128xbf16, #tpu.memory_space<vmem>>, vector<1x128xbf16>,
    %c0_165 = arith.constant 0 : index
    %c0_166 = arith.constant 0 : index
    %c0_167 = arith.constant 0 : index
    %127 = vector.load %arg3[%c0_165, %c0_166, %c0_167] : memref<1x8x16xbf16, #tpu.memory_space<vmem>>, vector<1x8x16xbf16>
    %128 = vector.shape_cast %127 : vector<1x8x16xbf16> to vector<8x16xbf16>
    %c0_168 = arith.constant 0 : index
    %c0_169 = arith.constant 0 : index
    %129 = vector.load %arg5[%c0_168, %c0_169] : memref<16x128xbf16, #tpu.memory_space<vmem>>, vector<16x128xbf16>
    %cst = arith.constant dense<0.000000e+00> : vector<8x128xf32>
    %130 = tpu.matmul %128, %129, %cst {dimension_numbers = #tpu.dot_dimension_numbers<[1], [0], [0], [1], [0, 0, 1, 1], [], []>} : vector<8x16xbf16>, vector<16x128xbf16>, vector<8x128xf32> -> vector<8x128xf32>
    %131 = math.tanh %130 : vector<8x128xf32>
    %132 = arith.truncf %131 : vector<8x128xf32> to vector<8x128xbf16>
    %c0_170 = arith.constant 0 : index
    %c0_171 = arith.constant 0 : index
    %c0_172 = arith.constant 0 : index
    %133 = vector.load %arg4[%c0_170, %c0_171, %c0_172] : memref<1x8x128xbf16, #tpu.memory_space<vmem>>, vector<1x8x128xbf16>
    %134 = vector.shape_cast %133 : vector<1x8x128xbf16> to vector<8x128xbf16>
    %135 = vector.shape_cast %132 : vector<8x128xbf16> to vector<1x8x128xbf16>
    tpu.vector_store %arg4[%c0_170, %c0_171, %c0_172], %135 {strides = array<i32>} : memref<1x8x128xbf16, #tpu.memory_space<vmem>>, vector<1x8x128xbf16>,
    return
  }
  func.func @transform_0(%arg0: i32, %arg1: i32) -> (i32, i32, i32, i32) {
    %c0_i32 = arith.constant 0 : i32
    %c0_i32_0 = arith.constant 0 : i32
    %c0_i32_1 = arith.constant 0 : i32
    return %arg1, %arg0, %c0_i32, %c0_i32_0 : i32, i32, i32, i32
  }
  func.func @transform_1(%arg0: i32, %arg1: i32) -> (i32, i32, i32) {
    %c0_i32 = arith.constant 0 : i32
    %c0_i32_0 = arith.constant 0 : i32
    %c0_i32_1 = arith.constant 0 : i32
    return %arg0, %c0_i32, %c0_i32_0 : i32, i32, i32
  }
  func.func @transform_2(%arg0: i32, %arg1: i32) -> (i32, i32, i32) {
    %c0_i32 = arith.constant 0 : i32
    %c0_i32_0 = arith.constant 0 : i32
    return %arg0, %c0_i32, %arg1 : i32, i32, i32
  }
}

</mosaic_0001>

<bundles_post_ra>
// kernel: tpu_custom_call.1
= control target key start
LH: loop header
LB: loop body
LE: loop exit
PB: predicated region body
PF: predicated region fallthrough
CT: control target
= control target key end

     0   :  { %7 = vsyncpa [#allocation4], 0  ;;  %s777_s0 = inlined_call_operand.hbm [shape: f32[2,1,1,78], index: 0, kind: input, shape index: {}]   ;;  %s778_s1 = inlined_call_operand.hbm [shape: bf16[1,8,16], index: 1, kind: input, shape index: {}]   ;;  %s779_s2 = inlined_call_operand.hbm [shape: bf16[1,8,128], index: 2, kind: output, shape index: {}]  }
   0x1   :  { %8 = vsyncpa [#allocation7], 0 }
   0x2   :  { %9 = vsyncpa [#allocation5], 0  ;;  %s623_s9 = smov [#allocation3]   ;;  %s551_s13 = scalar_lea.hbm %s777_s0, 32 }
   0x3   :  { %s15_s10 = sshll.u32 %s623_s9, 4  ;;  %p552_p0 = scmp.ne.s32.totalorder %s777_s0, %s551_s13  ;;  %s16_s10 = int_to_ptr.vmem [resolvable:$true] %s15_s10 }
   0x4   :  { %p555_p1 = scmp.lt.u32.totalorder %s551_s13, %s777_s0 }
   0x6   :  { %p557_p2 = pnand %p555_p1, %p552_p0 }
   0x8   :  { %560 = shalt.err (!%p557_p2)
}
   0x9   :  { %s561_s18 = scalar_lea.vmem %s16_s10, 32  ;;  %p566_p4 = scmp.lt.s32.totalorder %s16_s10, %s16_s10 }
   0xa   :  { %p562_p3 = scmp.ne.s32.totalorder %s16_s10, %s561_s18  ;;  %p567_p5 = scmp.lt.s32.totalorder %s561_s18, %s561_s18 }
   0xc   :  { %p568_p6 = por %p567_p5, %p566_p4 }
   0xe   :  { %p569_p7 = pnand %p568_p6, %p562_p3 }
  0x10   :  { %572 = shalt.err (!%p569_p7)
}
  0x11   :  { %s624_s19 = smov 16   ;;  %s625_s20 = smov 1  }
  0x12   :  { %21 = dma.hbm_to_vmem [thread:$0]  %s777_s0, 32, %s16_s10, [#allocation4], %s624_s19, %s624_s19, %s625_s20  }
  0x13   :  { %s626_s23 = smov [#allocation6]   ;;  %s573_s27 = scalar_lea.hbm %s778_s1, 64 }
  0x14   :  { %s28_s24 = sshll.u32 %s626_s23, 4  ;;  %p574_p8 = scmp.ne.s32.totalorder %s778_s1, %s573_s27  ;;  %s29_s24 = int_to_ptr.vmem [resolvable:$true] %s28_s24 }
  0x15   :  { %p577_p9 = scmp.lt.u32.totalorder %s573_s27, %s778_s1 }
  0x17   :  { %p579_p10 = pnand %p577_p9, %p574_p8 }
  0x19   :  { %582 = shalt.err (!%p579_p10)
}
  0x1a   :  { %s583_s4 = scalar_lea.vmem %s29_s24, 64  ;;  %p588_p12 = scmp.lt.s32.totalorder %s29_s24, %s29_s24 }
  0x1b   :  { %p584_p11 = scmp.ne.s32.totalorder %s29_s24, %s583_s4  ;;  %p589_p13 = scmp.lt.s32.totalorder %s583_s4, %s583_s4 }
  0x1d   :  { %p590_p0 = por %p589_p13, %p588_p12 }
  0x1f   :  { %p591_p1 = pnand %p590_p0, %p584_p11 }
  0x21   :  { %594 = shalt.err (!%p591_p1)
}
  0x22   :  { %31 = dma.hbm_to_vmem [thread:$0]  %s778_s1, 64, %s29_s24, [#allocation7]  }
  0x23   :  { %617 = dma.done.wait [#allocation4], 32  }
  0x24   :  { %618 = vsyncadd [#allocation4], 4294967264 }
  0x25   :  { %619 = dma.done.wait [#allocation7], 64  }
  0x26   :  { %620 = vsyncadd [#allocation7], 4294967232  ;;  %v114_v0 = vld [vmem:[#allocation3] sm:$0x1]  ;;  %s627_s6 = smov 122   ;;  %s628_s1 = smov 126  }
  0x27   :  { %v60_v1 = vld [vmem:[#allocation3] sm:$0x1]  ;;  %v115_v3 = vpack.c.bf16 %v114_v0, %v114_v0  ;;  %s629_s7 = smov 120   ;;  %s630_s8 = smov 124   ;;  %vm41_vm0 = vcmask 516096   ;;  %vm656_vm3 = vmmov 0  }
  0x28   :  { %v141_v2 = vld [vmem:[#allocation3] sm:$0x1]  ;;  %v61_v4 = vpack.c.bf16 %v60_v1, %v60_v1  ;;  %s631_s9 = smov 116   ;;  %s632_s10 = smov 118   ;;  %vm781_vm1 = vsmask.f32 256 }
  0x29   :  { %v142_v5 = vpack.c.bf16 %v141_v2, %v141_v2  ;;  %v87_v6 = vld [vmem:[#allocation3] sm:$0x1]  ;;  %v117_v11 = vrot.slane %v115_v3, 5  ;;  %s633_s11 = smov 125   ;;  %s634_s12 = smov 127   ;;  %vm43_vm2 = vmand %vm41_vm0, %vm781_vm1  ;;  %vm121_vm4 = vcmask 519171  }
  0x2a   :  { %v195_v7 = vld [vmem:[#allocation3] sm:$0x1]  ;;  %v88_v8 = vpack.c.bf16 %v87_v6, %v87_v6  ;;  %v63_v12 = vrot.slane %v61_v4, 7  ;;  %s635_s13 = smov 121   ;;  %s636_s14 = smov 123   ;;  %v643_v6 = vmov 0.0  }
  0x2b   :  { %v168_v9 = vld [vmem:[#allocation3] sm:$0x1]  ;;  %v196_v13 = vpack.c.bf16 %v195_v7, %v195_v7  ;;  %118 = vrot.lane.b32.xlu1 %v117_v11, %s627_s6  ;;  %v144_v14 = vrot.slane %v142_v5, 4  ;;  %v259_v46 = vld [vmem:[#allocation3 + $0x1] sm:$0x1]  ;;  %s637_s15 = smov 117   ;;  %507 = vmatprep.subr.bf16.mxu0 %v643_v6 }
  0x2c   :  { %v73_v10 = vld [vmem:[#allocation3] sm:$0x1]  ;;  %64 = vrot.lane.b32.xlu0 %v63_v12, %s628_s1  ;;  %v90_v15 = vrot.slane %v88_v8, 6  ;;  %v169_v16 = vpack.c.bf16 %v168_v9, %v168_v9  ;;  %v44_v48 = vld [vmem:[#allocation2] sm:$0x1]  ;;  %s638_s16 = smov 119   ;;  %v260_v52 = vpack.c.bf16 %v259_v46, %v259_v46  ;;  %509 = vmatprep.mubr.msk.bf16.mxu0 %vm656_vm3, %v643_v6 }
  0x2d   :  { %v74_v17 = vpack.c.bf16 %v73_v10, %v73_v10  ;;  %v47_v18 = vld [vmem:[#allocation3] sm:$0x1]  ;;  %v198_v21 = vrot.slane %v196_v13, 2  ;;  %v236_v54 = vld [vmem:[#allocation3 + $0x1] sm:$0x1]  ;;  %s639_s17 = smov 114  }
  0x2e   :  { %v127_v19 = vld [vmem:[#allocation3] sm:$0x1]  ;;  %v48_v22 = vpack.c.bf16 %v47_v18, %v47_v18  ;;  %v171_v23 = vrot.slane %v169_v16, 3  ;;  %v309_v55 = vld [vmem:[#allocation3 + $0x1] sm:$0x1]  ;;  %s640_s18 = smov 115   ;;  %v237_v58 = vpack.c.bf16 %v236_v54, %v236_v54 }
  0x2f   :  { %v100_v20 = vld [vmem:[#allocation3] sm:$0x1]  ;;  %145 = vrot.lane.b32.xlu1 %v144_v14, %s629_s7  ;;  %v76_v24 = vshll.u32 %v74_v17, 16  ;;  %v128_v25 = vpack.c.bf16 %v127_v19, %v127_v19  ;;  %v284_v56 = vld [vmem:[#allocation3 + $0x1] sm:$0x1]  ;;  %v262_v57 = vrot.slane %v260_v52, 7  ;;  %v310_v59 = vpack.c.bf16 %v309_v55, %v309_v55 }
  0x30   :  { %91 = vrot.lane.b32.xlu0 %v90_v15, %s630_s8  ;;  %v101_v26 = vpack.c.bf16 %v100_v20, %v100_v20  ;;  %v181_v27 = vld [vmem:[#allocation3] sm:$0x1]  ;;  %v50_v29 = vshll.u32 %v48_v22, 16  ;;  %v285_v60 = vpack.c.bf16 %v284_v56, %v284_v56  ;;  %v359_v61 = vld [vmem:[#allocation3 + $0x1] sm:$0x1]  ;;  %s641_s19 = smov 62  }
  0x31   :  { %v154_v28 = vld [vmem:[#allocation3] sm:$0x1]  ;;  %v182_v30 = vpack.c.bf16 %v181_v27, %v181_v27  ;;  %v78_v31 = vrot.slane %v76_v24, 7  ;;  %v130_v32 = vshll.u32 %v128_v25, 16  ;;  %v334_v62 = vld [vmem:[#allocation3 + $0x1] sm:$0x1]  ;;  %v360_v63 = vpack.c.bf16 %v359_v61, %v359_v61 }
  0x32   :  { %v103_v33 = vshll.u32 %v101_v26, 16  ;;  %v155_v34 = vpack.c.bf16 %v154_v28, %v154_v28  ;;  %v208_v35 = vld [vmem:[#allocation3] sm:$0x1]  ;;  %s642_s20 = smov 64   ;;  %v312_v0 = vrot.slane %v310_v59, 5  ;;  %v287_v1 = vrot.slane %v285_v60, 6 }
  0x33   :  { %199 = vrot.lane.b32.xlu1 %v198_v21, %s631_s9  ;;  %v184_v36 = vshll.u32 %v182_v30, 16  ;;  %v132_v37 = vrot.slane %v130_v32, 5  ;;  %v209_v40 = vpack.c.bf16 %v208_v35, %v208_v35  ;;  %v222_v41 = vld [vmem:[#allocation3] sm:$0x1]  ;;  %v335_v2 = vpack.c.bf16 %v334_v62, %v334_v62  ;;  %v409_v3 = vld [vmem:[#allocation3 + $0x1] sm:$0x1] }
  0x34   :  { %172 = vrot.lane.b32.xlu0 %v171_v23, %s632_s10  ;;  %v105_v38 = vrot.slane %v103_v33, 6  ;;  %v157_v39 = vshll.u32 %v155_v34, 16  ;;  %v223_v44 = vpack.c.bf16 %v222_v41, %v222_v41  ;;  %v39_v47 = vld [vmem:[#allocation3] sm:$0x1]  ;;  %v384_v4 = vld [vmem:[#allocation3 + $0x1] sm:$0x1]  ;;  %v410_v7 = vpack.c.bf16 %v409_v3, %v409_v3 }
  0x35   :  { %v186_v42 = vrot.slane %v184_v36, 3  ;;  %v211_v45 = vshll.u32 %v209_v40, 16  ;;  %v40_v49 = vpack.c.bf16 %v39_v47, %v39_v47  ;;  %v271_v5 = vld [vmem:[#allocation3 + $0x1] sm:$0x1]  ;;  %s644_s21 = smov 58   ;;  %s645_s22 = smov 60   ;;  %v385_v10 = vpack.c.bf16 %v384_v4, %v384_v4 }
  0x36   :  { %v159_v43 = vrot.slane %v157_v39, 4  ;;  %v225_v50 = vrot.slane %v223_v44, 1  ;;  %v362_v8 = vrot.slane %v360_v63, 3  ;;  %v337_v9 = vrot.slane %v335_v2, 4  ;;  %v247_v12 = vld [vmem:[#allocation3 + $0x1] sm:$0x1] }
  0x37   :  { %79 = vrot.lane.b32.xlu1 %v78_v31, %s633_s11  ;;  %v213_v51 = vrot.slane %v211_v45, 2  ;;  %v45_v53 = vsel %vm43_vm2, %v40_v49, %v44_v48  ;;  %v272_v11 = vpack.c.bf16 %v271_v5, %v271_v5  ;;  %v321_v13 = vld [vmem:[#allocation3 + $0x1] sm:$0x1]  ;;  %v412_v15 = vrot.slane %v410_v7, 1  ;;  %s646_s23 = smov 54   ;;  %s647_s24 = smov 56  }
  0x38   :  { %52 = vrot.lane.b32.xlu0 %v50_v29, %s634_s12  ;;  %46 = vst [vmem:[#allocation2] sm:$0x1] %v45_v53  ;;  %v296_v14 = vld [vmem:[#allocation3 + $0x1] sm:$0x1]  ;;  %v248_v16 = vpack.c.bf16 %v247_v12, %v247_v12  ;;  %v387_v17 = vrot.slane %v385_v10, 2  ;;  %v322_v19 = vpack.c.bf16 %v321_v13, %v321_v13  ;;  %s648_s25 = smov 50  }
  0x39   :  { %v274_v18 = vshll.u32 %v272_v11, 16  ;;  %v297_v20 = vpack.c.bf16 %v296_v14, %v296_v14  ;;  %v371_v21 = vld [vmem:[#allocation3 + $0x1] sm:$0x1]  ;;  %s649_s26 = smov 52   ;;  %s650_s27 = smov 61   ;;  %vm67_vm6 = vcmask 517121  }
  0x3a   :  { %v346_v22 = vld [vmem:[#allocation3 + $0x1] sm:$0x1]  ;;  %v250_v23 = vshll.u32 %v248_v16, 16  ;;  %v372_v24 = vpack.c.bf16 %v371_v21, %v371_v21  ;;  %v324_v26 = vshll.u32 %v322_v19, 16  ;;  %s651_s28 = smov 63   ;;  %s652_s29 = smov 57  }
  0x3b   :  { %133 = vrot.lane.b32.xlu1 %v132_v37, %s635_s13  ;;  %v276_v25 = vrot.slane %v274_v18, 7  ;;  %v299_v27 = vshll.u32 %v297_v20, 16  ;;  %v347_v28 = vpack.c.bf16 %v346_v22, %v346_v22  ;;  %v396_v29 = vld [vmem:[#allocation3 + $0x1] sm:$0x1]  ;;  %s653_s30 = smov 59   ;;  %s654_s3 = smov 53  }
  0x3c   :  { %106 = vrot.lane.b32.xlu0 %v105_v38, %s636_s14  ;;  %v374_v30 = vshll.u32 %v372_v24, 16  ;;  %v326_v31 = vrot.slane %v324_v26, 5  ;;  %v397_v34 = vpack.c.bf16 %v396_v29, %v396_v29  ;;  %s655_s4 = smov 55   ;;  %s657_s0 = smov 51   ;;  %vm780_vm5 = vsmask.f32 3328 }
  0x3d   :  { %v301_v32 = vrot.slane %v299_v27, 6  ;;  %v349_v33 = vshll.u32 %v347_v28, 16  ;;  %vm785_vm7 = vsmask.f32 1280  ;;  %vm123_vm8 = vmand %vm121_vm4, %vm780_vm5  ;;  %vm148_vm9 = vcmask 520196   ;;  %s658_s5 = smov [#allocation8]  }
  0x3e   :  { %v376_v35 = vrot.slane %v374_v30, 3  ;;  %v399_v37 = vshll.u32 %v397_v34, 16  ;;  %v124_v39 = vld [vmem:[#allocation2] sm:$0x8]  ;;  %vm69_vm10 = vmand %vm67_vm6, %vm785_vm7  ;;  %v70_v40 = vld [vmem:[#allocation2] sm:$0x2] }
  0x3f   :  { %187 = vrot.lane.b32.xlu1 %v186_v42, %s637_s15  ;;  %v351_v36 = vrot.slane %v349_v33, 4  ;;  %vm782_vm11 = vsmask.f32 4352  ;;  %vm94_vm12 = vcmask 518146   ;;  %vm783_vm13 = vsmask.f32 2304 }
  0x40   :  { %160 = vrot.lane.b32.xlu0 %v159_v43, %s638_s16  ;;  %v401_v38 = vrot.slane %v399_v37, 2  ;;  %vm708_vm14 = vmand %vm148_vm9, %vm782_vm11  ;;  %vm202_vm15 = vcmask 522246   ;;  %v151_v46 = vld [vmem:[#allocation2] sm:$0x10]  ;;  %v97_v47 = vld [vmem:[#allocation2] sm:$0x4] }
  0x41   :  { %vm96_vm2 = vmand %vm94_vm12, %vm783_vm13  ;;  %vm784_vm3 = vsmask.f32 6400  ;;  %vm175_vm5 = vcmask 521221   ;;  %vm176_vm1 = vsmask.f32 5376  ;;  %s493_s6 = sshll.u32 %s658_s5, 4  ;;  %s494_s6 = int_to_ptr.vmem [resolvable:$true] %s493_s6 }
  0x42   :  { %v205_v52 = vld [vmem:[#allocation2] sm:$0x40]  ;;  %v178_v53 = vld [vmem:[#allocation2] sm:$0x20]  ;;  %vm786_vm11 = vsmask.f32 7942  ;;  %p600_p3 = scmp.lt.s32.totalorder %s494_s6, %s494_s6 }
  0x43   :  { %226 = vrot.lane.b32.xlu1 %v225_v50, %s639_s17  ;;  %vm55_vm13 = vsmask.f32 7938  ;;  %vm791_vm7 = vsmask.f32 7946  ;;  %v232_v13 = vld [vmem:[#allocation2] sm:$0x80] }
  0x44   :  { %214 = vrot.lane.b32.xlu0 %v213_v51, %s640_s18  ;;  %s595_s1 = scalar_lea.vmem %s494_s6, 64 }
  0x45   :  { %p596_p2 = scmp.ne.s32.totalorder %s494_s6, %s595_s1  ;;  %p601_p4 = scmp.lt.s32.totalorder %s595_s1, %s595_s1 }
  0x47   :  { %263 = vrot.lane.b32.xlu1 %v262_v57, %s641_s19  ;;  %p602_p5 = por %p601_p4, %p600_p3 }
  0x48   :  { %239 = vrot.lane.b32.xlu0 %v237_v58, %s642_s20  ;;  %v57_v58 = vld [vmem:[#allocation2] sm:$0x1] }
  0x49   :  { %p603_p6 = pnand %p602_p5, %p596_p2 }
  0x4b   :  { %313 = vrot.lane.b32.xlu1 %v312_v0, %s644_s21 }
  0x4c   :  { %288 = vrot.lane.b32.xlu0 %v287_v1, %s645_s22 }
  0x4f   :  { %363 = vrot.lane.b32.xlu1 %v362_v8, %s646_s23 }
  0x50   :  { %338 = vrot.lane.b32.xlu0 %v337_v9, %s647_s24 }
  0x53   :  { %413 = vrot.lane.b32.xlu1 %v412_v15, %s648_s25 }
  0x54   :  { %388 = vrot.lane.b32.xlu0 %v387_v17, %s649_s26  ;;  %v421_v17 = vlaneseq }
  0x56   :  { %v422_v24 = vshrl.u32 %v421_v17, 7 }
  0x57   :  { %277 = vrot.lane.b32.xlu1 %v276_v25, %s650_s27 }
  0x58   :  { %252 = vrot.lane.b32.xlu0 %v250_v23, %s651_s28 }
  0x5b   :  { %327 = vrot.lane.b32.xlu1 %v326_v31, %s652_s29 }
  0x5c   :  { %302 = vrot.lane.b32.xlu0 %v301_v32, %s653_s30 }
  0x5f   :  { %377 = vrot.lane.b32.xlu1 %v376_v35, %s654_s3 }
  0x60   :  { %352 = vrot.lane.b32.xlu0 %v351_v36, %s655_s4 }
  0x64   :  { %402 = vrot.lane.b32.xlu0 %v401_v38, %s657_s0 }
  0x9d   :  { %v119_v41 = vpop.permute.xlu1 %118 }
  0x9e   :  { %v65_v42 = vpop.permute.xlu0 %64  ;;  %v125_v43 = vsel %vm123_vm8, %v119_v41, %v124_v39  ;;  %vm204_vm8 = vmand %vm202_vm15, %vm784_vm3  ;;  %vm787_vm3 = vsmask.f32 7950 }
  0x9f   :  { %v71_v44 = vsel %vm69_vm10, %v65_v42, %v70_v40  ;;  %126 = vst [vmem:[#allocation2] sm:$0x8] %v125_v43  ;;  %vm177_vm10 = vmand %vm175_vm5, %vm176_vm1 }
  0xa0   :  { %72 = vst [vmem:[#allocation2] sm:$0x2] %v71_v44 }
  0xa1   :  { %v146_v48 = vpop.permute.xlu1 %145 }
  0xa2   :  { %v92_v49 = vpop.permute.xlu0 %91  ;;  %v152_v50 = vsel %vm708_vm14, %v146_v48, %v151_v46  ;;  %vm83_vm14 = vmand %vm67_vm6, %vm786_vm11  ;;  %vm788_vm11 = vsmask.f32 7954 }
  0xa3   :  { %v98_v51 = vsel %vm96_vm2, %v92_v49, %v97_v47  ;;  %153 = vst [vmem:[#allocation2] sm:$0x10] %v152_v50  ;;  %vm56_vm2 = vmand %vm41_vm0, %vm55_vm13 }
  0xa4   :  { %99 = vst [vmem:[#allocation2] sm:$0x4] %v98_v51  ;;  %vm110_vm6 = vmand %vm94_vm12, %vm791_vm7  ;;  %vm341_vm7 = vcmask 1044996  }
  0xa5   :  { %v200_v54 = vpop.permute.xlu1 %199 }
  0xa6   :  { %v173_v55 = vpop.permute.xlu0 %172  ;;  %v206_v56 = vsel %vm204_vm8, %v200_v54, %v205_v52  ;;  %vm137_vm8 = vmand %vm121_vm4, %vm787_vm3  ;;  %v138_v0 = vld [vmem:[#allocation2] sm:$0x8]  ;;  %vm790_vm3 = vsmask.f32 7962 }
  0xa7   :  { %v179_v57 = vsel %vm177_vm10, %v173_v55, %v178_v53  ;;  %207 = vst [vmem:[#allocation2] sm:$0x40] %v206_v56  ;;  %v84_v60 = vld [vmem:[#allocation2] sm:$0x2]  ;;  %vm789_vm10 = vsmask.f32 7958  ;;  %vm164_vm4 = vmand %vm148_vm9, %vm788_vm11 }
  0xa8   :  { %180 = vst [vmem:[#allocation2] sm:$0x20] %v179_v57  ;;  %vm191_vm0 = vmand %vm175_vm5, %vm789_vm10  ;;  %vm796_vm9 = vsmask.f32 1280  ;;  %vm792_vm11 = vcmask 1043971   ;;  %vm291_vm10 = vcmask 1042946  }
  0xa9   :  { %v80_v59 = vpop.permute.xlu1 %79  ;;  %vm218_vm5 = vmand %vm202_vm15, %vm790_vm3  ;;  %vm798_vm15 = vsmask.f32 3328  ;;  %vm366_vm3 = vcmask 1046021  }
  0xaa   :  { %v53_v61 = vpop.permute.xlu0 %52  ;;  %v85_v62 = vsel %vm83_vm14, %v80_v59, %v84_v60  ;;  %vm229_vm14 = vcmask 523271   ;;  %v165_v9 = vld [vmem:[#allocation2] sm:$0x10] }
  0xab   :  { %v58_v63 = vsel %vm56_vm2, %v53_v61, %v57_v58  ;;  %86 = vst [vmem:[#allocation2] sm:$0x2] %v85_v62  ;;  %v111_v2 = vld [vmem:[#allocation2] sm:$0x4]  ;;  %vm230_vm2 = vsmask.f32 7424 }
  0xac   :  { %59 = vst [vmem:[#allocation2] sm:$0x1] %v58_v63  ;;  %vm231_vm12 = vmand %vm229_vm14, %vm230_vm2 }
  0xad   :  { %v134_v1 = vpop.permute.xlu1 %133 }
  0xae   :  { %v107_v3 = vpop.permute.xlu0 %106  ;;  %v139_v4 = vsel %vm137_vm8, %v134_v1, %v138_v0  ;;  %vm266_vm8 = vcmask 1041921   ;;  %v219_v15 = vld [vmem:[#allocation2] sm:$0x40] }
  0xaf   :  { %v112_v5 = vsel %vm110_vm6, %v107_v3, %v111_v2  ;;  %140 = vst [vmem:[#allocation2] sm:$0x8] %v139_v4  ;;  %v192_v8 = vld [vmem:[#allocation2] sm:$0x20]  ;;  %vm793_vm6 = vcmask 1040896  }
  0xb0   :  { %113 = vst [vmem:[#allocation2] sm:$0x4] %v112_v5 }
  0xb1   :  { %v188_v7 = vpop.permute.xlu1 %187 }
  0xb2   :  { %v161_v10 = vpop.permute.xlu0 %160  ;;  %v193_v11 = vsel %vm191_vm0, %v188_v7, %v192_v8  ;;  %vm267_vm0 = vmand %vm266_vm8, %vm796_vm9  ;;  %v268_v21 = vld [vmem:[#allocation2] sm:$0x2] }
  0xb3   :  { %v166_v12 = vsel %vm164_vm4, %v161_v10, %v165_v9  ;;  %194 = vst [vmem:[#allocation2] sm:$0x20] %v193_v11  ;;  %vm797_vm4 = vsmask.f32 256  ;;  %v244_v23 = vld [vmem:[#allocation2] sm:$0x1] }
  0xb4   :  { %167 = vst [vmem:[#allocation2] sm:$0x10] %v166_v12  ;;  %vm243_vm14 = vmand %vm793_vm6, %vm797_vm4  ;;  %vm423_vm4 = vcmp.eq.s32.totalorder %v422_v24, 0  ;;  %vm391_vm6 = vcmask 1047046   ;;  %v438_v9 = vld [vmem:[#allocation6] sm:$0xf] }
  0xb5   :  { %v227_v14 = vpop.permute.xlu1 %226  ;;  %v503_v33 = vsel %vm423_vm4, 1.0, %v643_v6 }
  0xb6   :  { %v215_v16 = vpop.permute.xlu0 %214  ;;  %v233_v18 = vsel %vm231_vm12, %v227_v14, %v232_v13  ;;  %vm317_vm12 = vmand %vm792_vm11, %vm798_vm15  ;;  %v318_v27 = vld [vmem:[#allocation2] sm:$0x8]  ;;  %vm416_vm11 = vcmask 1048071   ;;  %v426_v40 = vpack.c.bf16 %v503_v33, %v503_v33 }
  0xb7   :  { %v220_v19 = vsel %vm218_vm5, %v215_v16, %v219_v15  ;;  %234 = vst [vmem:[#allocation2] sm:$0x80] %v233_v18  ;;  %vm799_vm5 = vsmask.f32 2304  ;;  %v293_v29 = vld [vmem:[#allocation2] sm:$0x4] }
  0xb8   :  { %221 = vst [vmem:[#allocation2] sm:$0x40] %v220_v19  ;;  %vm292_vm9 = vmand %vm291_vm10, %vm799_vm5  ;;  %v428_v46 = vshll.u32 %v426_v40, 16 }
  0xb9   :  { %v264_v20 = vpop.permute.xlu1 %263 }
  0xba   :  { %v240_v22 = vpop.permute.xlu0 %239  ;;  %v269_v25 = vsel %vm267_vm0, %v264_v20, %v268_v21  ;;  %vm367_vm0 = vmand %vm366_vm3, %vm176_vm1  ;;  %v368_v35 = vld [vmem:[#allocation2] sm:$0x20]  ;;  %vm801_vm1 = vsmask.f32 6400  ;;  %v430_v53 = vrot.slane %v428_v46, 1 }
  0xbb   :  { %v245_v26 = vsel %vm243_vm14, %v240_v22, %v244_v23  ;;  %270 = vst [vmem:[#allocation2] sm:$0x2] %v269_v25  ;;  %vm800_vm14 = vsmask.f32 4352  ;;  %v343_v36 = vld [vmem:[#allocation2] sm:$0x10]  ;;  %vm392_vm5 = vmand %vm391_vm6, %vm801_vm1 }
  0xbc   :  { %246 = vst [vmem:[#allocation2] sm:$0x1] %v245_v26  ;;  %vm342_vm15 = vmand %vm341_vm7, %vm800_vm14  ;;  %vm433_vm14 = vsmask.f32 7966 }
  0xbd   :  { %v314_v28 = vpop.permute.xlu1 %313 }
  0xbe   :  { %v289_v30 = vpop.permute.xlu0 %288  ;;  %v319_v31 = vsel %vm317_vm12, %v314_v28, %v318_v27  ;;  %vm417_vm12 = vmand %vm416_vm11, %vm230_vm2  ;;  %v418_v41 = vld [vmem:[#allocation2] sm:$0x80]  ;;  %vm432_vm2 = vcmask 1047559  }
  0xbf   :  { %v294_v32 = vsel %vm292_vm9, %v289_v30, %v293_v29  ;;  %320 = vst [vmem:[#allocation2] sm:$0x8] %v319_v31  ;;  %v393_v43 = vld [vmem:[#allocation2] sm:$0x40]  ;;  %vm802_vm9 = vsmask.f32 7942 }
  0xc0   :  { %295 = vst [vmem:[#allocation2] sm:$0x4] %v294_v32  ;;  %vm280_vm4 = vmand %vm266_vm8, %vm802_vm9  ;;  %vm806_vm8 = vsmask.f32 7946 }
  0xc1   :  { %v364_v34 = vpop.permute.xlu1 %363  ;;  %vm434_vm9 = vmand %vm432_vm2, %vm433_vm14 }
  0xc2   :  { %v339_v37 = vpop.permute.xlu0 %338  ;;  %v369_v38 = vsel %vm367_vm0, %v364_v34, %v368_v35  ;;  %vm803_vm0 = vcmask 1040896   ;;  %v281_v48 = vld [vmem:[#allocation2] sm:$0x2] }
  0xc3   :  { %v344_v39 = vsel %vm342_vm15, %v339_v37, %v343_v36  ;;  %370 = vst [vmem:[#allocation2] sm:$0x20] %v369_v38  ;;  %vm255_vm11 = vmand %vm803_vm0, %vm55_vm13  ;;  %v256_v50 = vld [vmem:[#allocation2] sm:$0x1]  ;;  %vm804_vm15 = vsmask.f32 7950 }
  0xc4   :  { %345 = vst [vmem:[#allocation2] sm:$0x10] %v344_v39  ;;  %vm807_vm13 = vsmask.f32 7958  ;;  %vm808_vm0 = vsmask.f32 7954 }
  0xc5   :  { %v414_v42 = vpop.permute.xlu1 %413 }
  0xc6   :  { %v389_v44 = vpop.permute.xlu0 %388  ;;  %v419_v45 = vsel %vm417_vm12, %v414_v42, %v418_v41  ;;  %vm805_vm12 = vcmask 1043971   ;;  %v331_v54 = vld [vmem:[#allocation2] sm:$0x8] }
  0xc7   :  { %v394_v6 = vsel %vm392_vm5, %v389_v44, %v393_v43  ;;  %420 = vst [vmem:[#allocation2] sm:$0x80] %v419_v45  ;;  %vm330_vm1 = vmand %vm805_vm12, %vm804_vm15  ;;  %v306_v56 = vld [vmem:[#allocation2] sm:$0x4] }
  0xc8   :  { %395 = vst [vmem:[#allocation2] sm:$0x40] %v394_v6  ;;  %vm305_vm5 = vmand %vm291_vm10, %vm806_vm8  ;;  %vm809_vm10 = vsmask.f32 7962 }
  0xc9   :  { %v278_v47 = vpop.permute.xlu1 %277  ;;  %vm405_vm2 = vmand %vm391_vm6, %vm809_vm10 }
  0xca   :  { %v253_v49 = vpop.permute.xlu0 %252  ;;  %v282_v51 = vsel %vm280_vm4, %v278_v47, %v281_v48  ;;  %vm380_vm4 = vmand %vm366_vm3, %vm807_vm13  ;;  %v381_v63 = vld [vmem:[#allocation2] sm:$0x20] }
  0xcb   :  { %v257_v52 = vsel %vm255_vm11, %v253_v49, %v256_v50  ;;  %283 = vst [vmem:[#allocation2] sm:$0x2] %v282_v51  ;;  %vm355_vm11 = vmand %vm341_vm7, %vm808_vm0  ;;  %v356_v0 = vld [vmem:[#allocation2] sm:$0x10]  ;;  %vm440_vm7 = vcmask 130048  }
  0xcc   :  { %258 = vst [vmem:[#allocation2] sm:$0x1] %v257_v52 }
  0xcd   :  { %v328_v55 = vpop.permute.xlu1 %327 }
  0xce   :  { %v303_v57 = vpop.permute.xlu0 %302  ;;  %v332_v58 = vsel %vm330_vm1, %v328_v55, %v331_v54  ;;  %v435_v60 = vld [vmem:[#allocation2] sm:$0x80] }
  0xcf   :  { %v307_v59 = vsel %vm305_vm5, %v303_v57, %v306_v56  ;;  %333 = vst [vmem:[#allocation2] sm:$0x8] %v332_v58  ;;  %v436_v61 = vsel %vm434_vm9, %v430_v53, %v435_v60  ;;  %v406_v4 = vld [vmem:[#allocation2] sm:$0x40] }
  0xd0   :  { %308 = vst [vmem:[#allocation2] sm:$0x4] %v307_v59  ;;  %437 = vst [vmem:[#allocation2] sm:$0x80] %v436_v61 }
  0xd1   :  { %v378_v62 = vpop.permute.xlu1 %377 }
  0xd2   :  { %v353_v1 = vpop.permute.xlu0 %352  ;;  %v382_v2 = vsel %vm380_vm4, %v378_v62, %v381_v63 }
  0xd3   :  { %v357_v3 = vsel %vm355_vm11, %v353_v1, %v356_v0  ;;  %383 = vst [vmem:[#allocation2] sm:$0x20] %v382_v2 }
  0xd4   :  { %358 = vst [vmem:[#allocation2] sm:$0x10] %v357_v3 }
  0xd6   :  { %v403_v5 = vpop.permute.xlu0 %402 }
  0xd7   :  { %v407_v7 = vsel %vm405_vm2, %v403_v5, %v406_v4 }
  0xd8   :  { %408 = vst [vmem:[#allocation2] sm:$0x40] %v407_v7 }
  0xdf   :  { %v439_v8 = vld [vmem:[#allocation2] sm:$0xff] }
  0xe0   :  { %508 = vmatpush3.bf16.msra.mxu0 %v439_v8 }
  0xe3   :  { %510 = vmatmul.mubr.msk.bf16.vlgmr.msra.gmra.mrb[0].mxu0 %vm440_vm7, %v438_v9 }
 0x1b6   :  { %v478_v10 = vpop.f32.mrb[0].mxu0 }
 0x1b7   :  { %549 = vtanh.f32 %v478_v10  ;;  %v511_v11 = vpop.f32.mrb[1].mxu0 }
 0x1b8   :  { %v481_v12 = vpop.f32.mrb[2].mxu0 }
 0x1b9   :  { %v512_v13 = vpop.f32.mrb[3].mxu0 }
 0x1c1   :  { %v550_v14 = vpop.eup %549 }
 0x1c2   :  { %v485_v15 = vpack.c.bf16 %v550_v14, %v550_v14 }
 0x1c4   :  { %486 = vst [vmem:[#allocation8] sm:$0xf] %v485_v15 }
 0x1c5   :  { %606 = shalt.err (!%p603_p6)
}
 0x1c6   :  { %s607_s9 = scalar_lea.hbm %s779_s2, 64 }
 0x1c7   :  { %p608_p7 = scmp.ne.s32.totalorder %s779_s2, %s607_s9  ;;  %p611_p8 = scmp.lt.u32.totalorder %s607_s9, %s779_s2 }
 0x1c9   :  { %p613_p9 = pnand %p611_p8, %p608_p7 }
 0x1cb   :  { %616 = shalt.err (!%p613_p9)
}
 0x1cc   :  { %496 = dma.vmem_to_hbm [thread:$0]  %s494_s6, 64, %s779_s2, [#allocation5]  }
 0x1cd   :  { %621 = dma.done.wait [#allocation5], 64  }
 0x1ce   :  { %622 = vsyncadd [#allocation5], 4294967232 }
 0x1cf   :  { %500 = vsyncpa [#allocation4], 1 }
 0x1d0   :  { %501 = vsyncpa [#allocation7], 1 }
 0x1d1   :  { %502 = vsyncpa [#allocation5], 1 }

</bundles_post_ra>
